<compile_context>
chip_gen: v7x
topology: tpu7x:2x2x1
jax: 0.10.0
libtpu: 0.0.40
codegen_flags: <defaults>
</compile_context>

<pallas_src>
import functools

import jax
import jax.numpy as jnp
from jax.experimental import pallas as pl
from jax.experimental.pallas import tpu as pltpu

PACK_W = 128          # lane width of every packed block / activation
N_WEIGHT_BLOCKS = 8   # (128,128) bf16 weight blocks in the pack
BIAS_ROWS = 16        # bias block rows (padded to bf16 sublane tile)


def _round_up(n, m):
    return (n + m - 1) // m * m


def _leaky_relu(v, slope=0.2):
    return jnp.where(v > 0, v, slope * v)


# -----------------------------------------------------------------------------
# Parameter packing: 8 padded (128,128) weight blocks + one (16,128) bias block,
# all bf16, in ONE buffer -> a single parameter DMA.
# -----------------------------------------------------------------------------
def pack_params(params, class_dim, input_dim, hidden_dim, latent_dim):
    W = PACK_W
    # TODO(synk): this single-vreg-width layout requires the small dims used
    # here; input_dim=784 (MNIST) would need lane tiling of the slab/weights.
    assert 2 + input_dim + class_dim <= W, "input slab must fit in 128 lanes"
    assert hidden_dim <= W and latent_dim <= W and input_dim + 4 <= W

    x_off, y_off = 2, 2 + input_dim           # slab lanes: [eps | x | one-hot]

    we1_x = params["we1"][:input_dim]          # (in,  hid)
    we1_y = params["we1"][input_dim:]          # (lat, hid)
    wd1_z = params["wd1"][:2]                  # (2,   lat)
    wd1_y = params["wd1"][2:]                  # (lat, lat)
    emb = params["emb"]                        # (cls, lat)
    enc1_y = emb @ we1_y                       # one-hot @ enc1_y == y_emb @ we1_y
    dec1_y = emb @ wd1_y                       # one-hot @ dec1_y == y_emb @ wd1_y

    def z():
        return jnp.zeros((W, W), jnp.float32)

    # head_a: mean at lanes 0:2 (for z) AND [mean|log_var] at output lanes.
    head_a = (z().at[:latent_dim, 0:2].set(params["wmu"])
                 .at[:latent_dim, input_dim:input_dim + 2].set(params["wmu"])
                 .at[:latent_dim, input_dim + 2:input_dim + 4].set(params["wlv"]))
    # head_lv: log_var at lanes 0:2, aligned under the eps lanes of the slab.
    head_lv = z().at[:latent_dim, 0:2].set(params["wlv"])

    blocks = [
        z().at[x_off:x_off + input_dim, :hidden_dim].set(we1_x)          # 0: enc L1
           .at[y_off:y_off + class_dim, :hidden_dim].set(enc1_y),        #    (full slab)
        z().at[:hidden_dim, :latent_dim].set(params["we2"]),             # 1: enc L2
        head_a,                                                          # 2: head_a
        head_lv,                                                         # 3: head_lv
        z().at[0:2, :latent_dim].set(wd1_z),                             # 4: dec L1 (z)
        z().at[y_off:y_off + class_dim, :latent_dim].set(dec1_y),        # 5: dec L1 (class)
        z().at[:latent_dim, :hidden_dim].set(params["wd2"]),             # 6: dec L2
        z().at[:hidden_dim, :input_dim].set(params["wd3"]),              # 7: dec L3
    ]

    bias = jnp.zeros((BIAS_ROWS, W), jnp.float32)
    bias = bias.at[0, :hidden_dim].set(params["be1"].reshape(-1))
    bias = bias.at[1, :latent_dim].set(params["be2"].reshape(-1))
    bias = (bias.at[2, 0:2].set(params["bmu"].reshape(-1))
                .at[2, input_dim:input_dim + 2].set(params["bmu"].reshape(-1))
                .at[2, input_dim + 2:input_dim + 4].set(params["blv"].reshape(-1)))
    bias = bias.at[3, 0:2].set(params["blv"].reshape(-1))
    bias = bias.at[4, :latent_dim].set(params["bd1"].reshape(-1))
    bias = bias.at[5, :hidden_dim].set(params["bd2"].reshape(-1))
    bias = bias.at[6, :input_dim].set(params["bd3"].reshape(-1))

    pack = jnp.concatenate(blocks + [bias], axis=0).astype(jnp.bfloat16)
    meta = dict(bias_off=len(blocks) * W, input_dim=input_dim,
                class_dim=class_dim, x_off=x_off, y_off=y_off)
    return pack, meta


# -----------------------------------------------------------------------------
# The Pallas kernel: whole forward, everything lane-dense, all weights resident.
# -----------------------------------------------------------------------------
def cvae_kernel(meta, slab_ref, pk_ref, out_ref):
    W = PACK_W
    input_dim = meta["input_dim"]
    bias_off = meta["bias_off"]

    def wblk(k):                               # k-th (128,128) bf16 weight block
        return pk_ref[k * W:(k + 1) * W, :]

    def bias(i):                               # full (1,128) f32 bias row
        r = bias_off + i
        return pk_ref[r:r + 1, :].astype(jnp.float32)

    def mm(a, k):                              # (bt,128)@(128,128) MXU, f32 acc
        return jnp.dot(a.astype(jnp.bfloat16), wblk(k),
                       preferred_element_type=jnp.float32)

    slab = slab_ref[...]                       # (bt,128) f32: [eps | x | one-hot | 0]

    # ---- encoder: cat(x, y_emb) folded into one 128-wide matmul over the slab
    h1 = _leaky_relu(mm(slab, 0) + bias(0))    # pad lanes stay exactly 0
    h2 = _leaky_relu(mm(h1, 1) + bias(1))

    # ---- mean / log_var heads (lane-dense, no 2-lane slices) ----------------
    head_a = mm(h2, 2) + bias(2)               # mean@0:2, [mean|log_var]@in:in+4
    head_lv = mm(h2, 3) + bias(3)              # log_var@0:2, rest 0

    # ---- reparameterization: z = mean + log_var * eps (module uses log_var
    #      directly as the std); eps lives in slab lanes 0:2, extra lanes of
    #      z_full hit zero rows of the decoder weight.
    z_full = head_a + head_lv * slab

    # ---- decoder: cat(z, y_emb) as split matmuls (class term off the slab) --
    d1 = _leaky_relu(mm(z_full, 4) + mm(slab, 5) + bias(4))
    d2 = _leaky_relu(mm(d1, 6) + bias(5))
    x_hat = jax.nn.sigmoid(mm(d2, 7) + bias(6))   # pad lanes -> 0.5, sliced off

    # ---- single lane-dense 128-wide output: [x_hat | mean | log_var | 0...] -
    lane = jax.lax.broadcasted_iota(jnp.int32, x_hat.shape, 1)
    out_ref[...] = jnp.where(lane < input_dim, x_hat, head_a)


# -----------------------------------------------------------------------------
# Wrapper: builds the input slab, runs the kernel over batch tiles, splits out.
# -----------------------------------------------------------------------------
def build_input_slab(x, y, eps, meta, batch_tile):
    B = x.shape[0]
    Bp = _round_up(B, batch_tile)
    input_dim, class_dim = meta["input_dim"], meta["class_dim"]
    onehot = jax.nn.one_hot(y.reshape(-1), class_dim, dtype=jnp.float32)
    slab = jnp.zeros((Bp, PACK_W), jnp.float32)
    slab = slab.at[:B, 0:2].set(eps)
    slab = slab.at[:B, meta["x_off"]:meta["x_off"] + input_dim].set(x)
    slab = slab.at[:B, meta["y_off"]:meta["y_off"] + class_dim].set(onehot)
    return slab


def cvae_forward(x, y, eps, pack, meta):
    B, input_dim = x.shape
    assert input_dim == meta["input_dim"]
    bt = 128 if B >= 128 else _round_up(max(B, 1), 8)     # f32 sublane-aligned tile
    slab = build_input_slab(x, y, eps, meta, bt)
    Bp = slab.shape[0]

    cost = pl.CostEstimate(
        flops=2 * Bp * N_WEIGHT_BLOCKS * PACK_W * PACK_W,
        transcendentals=Bp * PACK_W,
        bytes_accessed=int(slab.size * 4 + pack.size * 2 + Bp * PACK_W * 4),
    )

    out = pl.pallas_call(
        functools.partial(cvae_kernel, meta),
        out_shape=jax.ShapeDtypeStruct((Bp, PACK_W), jnp.float32),
        grid=(Bp // bt,),
        in_specs=[
            pl.BlockSpec((bt, PACK_W), lambda i: (i, 0)),   # batch-tiled input slab
            pl.BlockSpec(pack.shape, lambda i: (0, 0)),     # params: resident, 1 DMA
        ],
        out_specs=pl.BlockSpec((bt, PACK_W), lambda i: (i, 0)),
        compiler_params=pltpu.CompilerParams(dimension_semantics=("parallel",)),
        cost_estimate=cost,
    )(slab, pack)

    x_hat = out[:B, :input_dim]
    mean = out[:B, input_dim:input_dim + 2]
    log_var = out[:B, input_dim + 2:input_dim + 4]
    return x_hat, mean, log_var


# -----------------------------------------------------------------------------
# Parameter init (PyTorch-Linear-style uniform bounds), f32.
# -----------------------------------------------------------------------------
def init_params(key, class_dim, input_dim, hidden_dim, latent_dim):
    ks = jax.random.split(key, 9)

    def lin(k, fan_in, fan_out):
        kw, kb = jax.random.split(k)
        bound = 1.0 / (fan_in ** 0.5)
        w = jax.random.uniform(kw, (fan_in, fan_out), jnp.float32, -bound, bound)
        b = jax.random.uniform(kb, (1, fan_out), jnp.float32, -bound, bound)
        return w, b

    enc_in = input_dim + latent_dim
    p = {}
    p["emb"] = jax.random.normal(ks[0], (class_dim, latent_dim), jnp.float32)
    p["we1"], p["be1"] = lin(ks[1], enc_in, hidden_dim)
    p["we2"], p["be2"] = lin(ks[2], hidden_dim, latent_dim)
    p["wmu"], p["bmu"] = lin(ks[3], latent_dim, 2)
    p["wlv"], p["blv"] = lin(ks[4], latent_dim, 2)
    p["wd1"], p["bd1"] = lin(ks[5], 2 + latent_dim, latent_dim)
    p["wd2"], p["bd2"] = lin(ks[6], latent_dim, hidden_dim)
    p["wd3"], p["bd3"] = lin(ks[7], hidden_dim, input_dim)
    return p


# -----------------------------------------------------------------------------
# References: (a) bf16-aware mirror of the kernel math (tight tolerance),
#             (b) plain f32 transcription of the PyTorch module (loose).
# -----------------------------------------------------------------------------
def cvae_reference_bf16(x, y, eps, params):
    input_dim = x.shape[1]
    class_dim = params["emb"].shape[0]
    bf = lambda a: a.astype(jnp.bfloat16)
    q = lambda a: a.astype(jnp.bfloat16).astype(jnp.float32)
    dot = lambda a, w: jnp.dot(bf(a), bf(w), preferred_element_type=jnp.float32)

    onehot = jax.nn.one_hot(y.reshape(-1), class_dim, dtype=jnp.float32)
    enc1_y = params["emb"] @ params["we1"][input_dim:]    # fused in f32 like the pack
    dec1_y = params["emb"] @ params["wd1"][2:]

    h1 = _leaky_relu(dot(x, params["we1"][:input_dim]) + dot(onehot, enc1_y)
                     + q(params["be1"]))
    h2 = _leaky_relu(dot(h1, params["we2"]) + q(params["be2"]))
    mean = dot(h2, params["wmu"]) + q(params["bmu"])
    log_var = dot(h2, params["wlv"]) + q(params["blv"])
    z = mean + log_var * eps
    d1 = _leaky_relu(dot(z, params["wd1"][:2]) + dot(onehot, dec1_y)
                     + q(params["bd1"]))
    d2 = _leaky_relu(dot(d1, params["wd2"]) + q(params["bd2"]))
    x_hat = jax.nn.sigmoid(dot(d2, params["wd3"]) + q(params["bd3"]))
    return x_hat, mean, log_var


def cvae_reference_f32(x, y, eps, params):
    y_emb = params["emb"][y.reshape(-1)]
    cat_x = jnp.concatenate([x, y_emb], axis=1)
    h1 = _leaky_relu(cat_x @ params["we1"] + params["be1"])
    h2 = _leaky_relu(h1 @ params["we2"] + params["be2"])
    mean = h2 @ params["wmu"] + params["bmu"]
    log_var = h2 @ params["wlv"] + params["blv"]
    z = mean + log_var * eps
    d1 = _leaky_relu(jnp.concatenate([z, y_emb], axis=1) @ params["wd1"] + params["bd1"])
    d2 = _leaky_relu(d1 @ params["wd2"] + params["bd2"])
    x_hat = jax.nn.sigmoid(d2 @ params["wd3"] + params["bd3"])
    return x_hat, mean, log_var


if __name__ == "__main__":
    # Small shapes consistent with the module's forward.
    B, CLASS_DIM, INPUT_DIM, HIDDEN_DIM, LATENT_DIM = 8, 10, 64, 32, 16

    root = jax.random.PRNGKey(0)
    k_par, k_x, k_y, k_eps = jax.random.split(root, 4)

    params = init_params(k_par, CLASS_DIM, INPUT_DIM, HIDDEN_DIM, LATENT_DIM)
    pack, meta = pack_params(params, CLASS_DIM, INPUT_DIM, HIDDEN_DIM, LATENT_DIM)

    x = jax.nn.sigmoid(jax.random.normal(k_x, (B, INPUT_DIM), jnp.float32))   # image-like
    y = jax.random.randint(k_y, (B, 1), 0, CLASS_DIM, dtype=jnp.int32)        # labels
    eps = jax.random.normal(k_eps, (B, 2), jnp.float32)                       # reparam noise

    fwd = jax.jit(lambda x_, y_, e_, p_: cvae_forward(x_, y_, e_, p_, meta))
    x_hat, mean, log_var = jax.block_until_ready(fwd(x, y, eps, pack))

    assert x_hat.shape == (B, INPUT_DIM) and mean.shape == (B, 2) and log_var.shape == (B, 2)

    # Tight check vs. a reference mirroring the kernel's bf16-weight math.
    rx, rm, rlv = cvae_reference_bf16(x, y, eps, params)
    assert jnp.allclose(x_hat, rx, atol=2e-3, rtol=2e-3)
    assert jnp.allclose(mean, rm, atol=2e-3, rtol=2e-3)
    assert jnp.allclose(log_var, rlv, atol=2e-3, rtol=2e-3)

    # Loose check vs. a straight f32 transcription of the PyTorch module.
    fx, fm, flv = cvae_reference_f32(x, y, eps, params)
    assert jnp.allclose(x_hat, fx, atol=3e-2, rtol=3e-2)
    assert jnp.allclose(mean, fm, atol=3e-2, rtol=3e-2)
    assert jnp.allclose(log_var, flv, atol=3e-2, rtol=3e-2)

    # TODO(synk): the original module uses log_var directly as the std in the
    # reparameterization (no exp(0.5*log_var)); replicated verbatim here.
    print("KERNEL_OK")
</pallas_src>

<mosaic_0001>
module attributes {stable_mosaic.version = 11 : i64} {
  func.func @cvae_kernel(%arg0: i32, %arg1: memref<8x128xf32, #tpu.memory_space<vmem>>, %arg2: memref<1040x128xbf16, #tpu.memory_space<vmem>>, %arg3: memref<8x128xf32, #tpu.memory_space<vmem>>) attributes {dimension_semantics = [#tpu.dimension_semantics<parallel>], iteration_bounds = array<i64: 1>, scalar_prefetch = 0 : i64, scratch_operands = 0 : i64, tpu.core_type = #tpu.core_type<tc>, window_params = [{transform_indices = @transform_0, window_bounds = array<i64: 8, 128>}, {pipeline_mode = #tpu.pipeline_mode<synchronous>, transform_indices = @transform_1, window_bounds = array<i64: 1040, 128>}, {transform_indices = @transform_2, window_bounds = array<i64: 8, 128>}]} {
    %c0 = arith.constant 0 : index
    %c0_0 = arith.constant 0 : index
    %0 = vector.load %arg1[%c0, %c0_0] : memref<8x128xf32, #tpu.memory_space<vmem>>, vector<8x128xf32>
    %1 = arith.truncf %0 : vector<8x128xf32> to vector<8x128xbf16>
    %c0_1 = arith.constant 0 : index
    %c0_2 = arith.constant 0 : index
    %2 = vector.load %arg2[%c0_1, %c0_2] : memref<1040x128xbf16, #tpu.memory_space<vmem>>, vector<128x128xbf16>
    %cst = arith.constant dense<0.000000e+00> : vector<8x128xf32>
    %3 = tpu.matmul %1, %2, %cst {dimension_numbers = #tpu.dot_dimension_numbers<[1], [0], [0], [1], [0, 0, 1, 1], [], []>} : vector<8x128xbf16>, vector<128x128xbf16>, vector<8x128xf32> -> vector<8x128xf32>
    %c1024 = arith.constant 1024 : index
    %c0_3 = arith.constant 0 : index
    %4 = vector.load %arg2[%c1024, %c0_3] : memref<1040x128xbf16, #tpu.memory_space<vmem>>, vector<1x128xbf16>
    %5 = arith.extf %4 : vector<1x128xbf16> to vector<1x128xf32>
    %6 = vector.broadcast %5 : vector<1x128xf32> to vector<8x128xf32>
    %7 = arith.addf %3, %6 : vector<8x128xf32>
    %cst_4 = arith.constant 0.000000e+00 : f32
    %8 = vector.broadcast %cst_4 : f32 to vector<8x128xf32>
    %9 = arith.cmpf ogt, %7, %8 : vector<8x128xf32>
    %cst_5 = arith.constant 2.000000e-01 : f32
    %10 = vector.broadcast %cst_5 : f32 to vector<8x128xf32>
    %11 = arith.mulf %10, %7 : vector<8x128xf32>
    %12 = arith.select %9, %7, %11 : vector<8x128xi1>, vector<8x128xf32>
    %13 = arith.truncf %12 : vector<8x128xf32> to vector<8x128xbf16>
    %c128 = arith.constant 128 : index
    %c0_6 = arith.constant 0 : index
    %14 = vector.load %arg2[%c128, %c0_6] : memref<1040x128xbf16, #tpu.memory_space<vmem>>, vector<128x128xbf16>
    %cst_7 = arith.constant dense<0.000000e+00> : vector<8x128xf32>
    %15 = tpu.matmul %13, %14, %cst_7 {dimension_numbers = #tpu.dot_dimension_numbers<[1], [0], [0], [1], [0, 0, 1, 1], [], []>} : vector<8x128xbf16>, vector<128x128xbf16>, vector<8x128xf32> -> vector<8x128xf32>
    %c1025 = arith.constant 1025 : index
    %c0_8 = arith.constant 0 : index
    %16 = vector.load %arg2[%c1025, %c0_8] : memref<1040x128xbf16, #tpu.memory_space<vmem>>, vector<1x128xbf16>
    %17 = arith.extf %16 : vector<1x128xbf16> to vector<1x128xf32>
    %18 = vector.broadcast %17 : vector<1x128xf32> to vector<8x128xf32>
    %19 = arith.addf %15, %18 : vector<8x128xf32>
    %cst_9 = arith.constant 0.000000e+00 : f32
    %20 = vector.broadcast %cst_9 : f32 to vector<8x128xf32>
    %21 = arith.cmpf ogt, %19, %20 : vector<8x128xf32>
    %cst_10 = arith.constant 2.000000e-01 : f32
    %22 = vector.broadcast %cst_10 : f32 to vector<8x128xf32>
    %23 = arith.mulf %22, %19 : vector<8x128xf32>
    %24 = arith.select %21, %19, %23 : vector<8x128xi1>, vector<8x128xf32>
    %25 = arith.truncf %24 : vector<8x128xf32> to vector<8x128xbf16>
    %c256 = arith.constant 256 : index
    %c0_11 = arith.constant 0 : index
    %26 = vector.load %arg2[%c256, %c0_11] : memref<1040x128xbf16, #tpu.memory_space<vmem>>, vector<128x128xbf16>
    %cst_12 = arith.constant dense<0.000000e+00> : vector<8x128xf32>
    %27 = tpu.matmul %25, %26, %cst_12 {dimension_numbers = #tpu.dot_dimension_numbers<[1], [0], [0], [1], [0, 0, 1, 1], [], []>} : vector<8x128xbf16>, vector<128x128xbf16>, vector<8x128xf32> -> vector<8x128xf32>
    %c1026 = arith.constant 1026 : index
    %c0_13 = arith.constant 0 : index
    %28 = vector.load %arg2[%c1026, %c0_13] : memref<1040x128xbf16, #tpu.memory_space<vmem>>, vector<1x128xbf16>
    %29 = arith.extf %28 : vector<1x128xbf16> to vector<1x128xf32>
    %30 = vector.broadcast %29 : vector<1x128xf32> to vector<8x128xf32>
    %31 = arith.addf %27, %30 : vector<8x128xf32>
    %32 = arith.truncf %24 : vector<8x128xf32> to vector<8x128xbf16>
    %c384 = arith.constant 384 : index
    %c0_14 = arith.constant 0 : index
    %33 = vector.load %arg2[%c384, %c0_14] : memref<1040x128xbf16, #tpu.memory_space<vmem>>, vector<128x128xbf16>
    %cst_15 = arith.constant dense<0.000000e+00> : vector<8x128xf32>
    %34 = tpu.matmul %32, %33, %cst_15 {dimension_numbers = #tpu.dot_dimension_numbers<[1], [0], [0], [1], [0, 0, 1, 1], [], []>} : vector<8x128xbf16>, vector<128x128xbf16>, vector<8x128xf32> -> vector<8x128xf32>
    %c1027 = arith.constant 1027 : index
    %c0_16 = arith.constant 0 : index
    %35 = vector.load %arg2[%c1027, %c0_16] : memref<1040x128xbf16, #tpu.memory_space<vmem>>, vector<1x128xbf16>
    %36 = arith.extf %35 : vector<1x128xbf16> to vector<1x128xf32>
    %37 = vector.broadcast %36 : vector<1x128xf32> to vector<8x128xf32>
    %38 = arith.addf %34, %37 : vector<8x128xf32>
    %39 = arith.mulf %38, %0 : vector<8x128xf32>
    %40 = arith.addf %31, %39 : vector<8x128xf32>
    %41 = arith.truncf %40 : vector<8x128xf32> to vector<8x128xbf16>
    %c512 = arith.constant 512 : index
    %c0_17 = arith.constant 0 : index
    %42 = vector.load %arg2[%c512, %c0_17] : memref<1040x128xbf16, #tpu.memory_space<vmem>>, vector<128x128xbf16>
    %cst_18 = arith.constant dense<0.000000e+00> : vector<8x128xf32>
    %43 = tpu.matmul %41, %42, %cst_18 {dimension_numbers = #tpu.dot_dimension_numbers<[1], [0], [0], [1], [0, 0, 1, 1], [], []>} : vector<8x128xbf16>, vector<128x128xbf16>, vector<8x128xf32> -> vector<8x128xf32>
    %44 = arith.truncf %0 : vector<8x128xf32> to vector<8x128xbf16>
    %c640 = arith.constant 640 : index
    %c0_19 = arith.constant 0 : index
    %45 = vector.load %arg2[%c640, %c0_19] : memref<1040x128xbf16, #tpu.memory_space<vmem>>, vector<128x128xbf16>
    %cst_20 = arith.constant dense<0.000000e+00> : vector<8x128xf32>
    %46 = tpu.matmul %44, %45, %cst_20 {dimension_numbers = #tpu.dot_dimension_numbers<[1], [0], [0], [1], [0, 0, 1, 1], [], []>} : vector<8x128xbf16>, vector<128x128xbf16>, vector<8x128xf32> -> vector<8x128xf32>
    %47 = arith.addf %43, %46 : vector<8x128xf32>
    %c1028 = arith.constant 1028 : index
    %c0_21 = arith.constant 0 : index
    %48 = vector.load %arg2[%c1028, %c0_21] : memref<1040x128xbf16, #tpu.memory_space<vmem>>, vector<1x128xbf16>
    %49 = arith.extf %48 : vector<1x128xbf16> to vector<1x128xf32>
    %50 = vector.broadcast %49 : vector<1x128xf32> to vector<8x128xf32>
    %51 = arith.addf %47, %50 : vector<8x128xf32>
    %cst_22 = arith.constant 0.000000e+00 : f32
    %52 = vector.broadcast %cst_22 : f32 to vector<8x128xf32>
    %53 = arith.cmpf ogt, %51, %52 : vector<8x128xf32>
    %cst_23 = arith.constant 2.000000e-01 : f32
    %54 = vector.broadcast %cst_23 : f32 to vector<8x128xf32>
    %55 = arith.mulf %54, %51 : vector<8x128xf32>
    %56 = arith.select %53, %51, %55 : vector<8x128xi1>, vector<8x128xf32>
    %57 = arith.truncf %56 : vector<8x128xf32> to vector<8x128xbf16>
    %c768 = arith.constant 768 : index
    %c0_24 = arith.constant 0 : index
    %58 = vector.load %arg2[%c768, %c0_24] : memref<1040x128xbf16, #tpu.memory_space<vmem>>, vector<128x128xbf16>
    %cst_25 = arith.constant dense<0.000000e+00> : vector<8x128xf32>
    %59 = tpu.matmul %57, %58, %cst_25 {dimension_numbers = #tpu.dot_dimension_numbers<[1], [0], [0], [1], [0, 0, 1, 1], [], []>} : vector<8x128xbf16>, vector<128x128xbf16>, vector<8x128xf32> -> vector<8x128xf32>
    %c1029 = arith.constant 1029 : index
    %c0_26 = arith.constant 0 : index
    %60 = vector.load %arg2[%c1029, %c0_26] : memref<1040x128xbf16, #tpu.memory_space<vmem>>, vector<1x128xbf16>
    %61 = arith.extf %60 : vector<1x128xbf16> to vector<1x128xf32>
    %62 = vector.broadcast %61 : vector<1x128xf32> to vector<8x128xf32>
    %63 = arith.addf %59, %62 : vector<8x128xf32>
    %cst_27 = arith.constant 0.000000e+00 : f32
    %64 = vector.broadcast %cst_27 : f32 to vector<8x128xf32>
    %65 = arith.cmpf ogt, %63, %64 : vector<8x128xf32>
    %cst_28 = arith.constant 2.000000e-01 : f32
    %66 = vector.broadcast %cst_28 : f32 to vector<8x128xf32>
    %67 = arith.mulf %66, %63 : vector<8x128xf32>
    %68 = arith.select %65, %63, %67 : vector<8x128xi1>, vector<8x128xf32>
    %69 = arith.truncf %68 : vector<8x128xf32> to vector<8x128xbf16>
    %c896 = arith.constant 896 : index
    %c0_29 = arith.constant 0 : index
    %70 = vector.load %arg2[%c896, %c0_29] : memref<1040x128xbf16, #tpu.memory_space<vmem>>, vector<128x128xbf16>
    %cst_30 = arith.constant dense<0.000000e+00> : vector<8x128xf32>
    %71 = tpu.matmul %69, %70, %cst_30 {dimension_numbers = #tpu.dot_dimension_numbers<[1], [0], [0], [1], [0, 0, 1, 1], [], []>} : vector<8x128xbf16>, vector<128x128xbf16>, vector<8x128xf32> -> vector<8x128xf32>
    %c1030 = arith.constant 1030 : index
    %c0_31 = arith.constant 0 : index
    %72 = vector.load %arg2[%c1030, %c0_31] : memref<1040x128xbf16, #tpu.memory_space<vmem>>, vector<1x128xbf16>
    %73 = arith.extf %72 : vector<1x128xbf16> to vector<1x128xf32>
    %74 = vector.broadcast %73 : vector<1x128xf32> to vector<8x128xf32>
    %75 = arith.addf %71, %74 : vector<8x128xf32>
    %76 = arith.negf %75 : vector<8x128xf32>
    %77 = math.exp %76 : vector<8x128xf32>
    %cst_32 = arith.constant 1.000000e+00 : f32
    %78 = vector.broadcast %cst_32 : f32 to vector<8x128xf32>
    %79 = arith.addf %78, %77 : vector<8x128xf32>
    %80 = arith.divf %78, %79 : vector<8x128xf32>
    %81 = tpu.iota {dimensions = array<i32: 1>} : vector<8x128xi32>
    %c64_i32 = arith.constant 64 : i32
    %82 = vector.broadcast %c64_i32 : i32 to vector<8x128xi32>
    %83 = arith.cmpi slt, %81, %82 : vector<8x128xi32>
    %84 = arith.select %83, %80, %31 : vector<8x128xi1>, vector<8x128xf32>
    %c0_33 = arith.constant 0 : index
    %c0_34 = arith.constant 0 : index
    %85 = vector.load %arg3[%c0_33, %c0_34] : memref<8x128xf32, #tpu.memory_space<vmem>>, vector<8x128xf32>
    tpu.vector_store %arg3[%c0_33, %c0_34], %84 {strides = array<i32>} : memref<8x128xf32, #tpu.memory_space<vmem>>, vector<8x128xf32>,
    return
  }
  func.func @transform_0(%arg0: i32) -> (i32, i32) {
    %c0_i32 = arith.constant 0 : i32
    %c0_i32_0 = arith.constant 0 : i32
    return %arg0, %c0_i32 : i32, i32
  }
  func.func @transform_1(%arg0: i32) -> (i32, i32) {
    %c0_i32 = arith.constant 0 : i32
    %c0_i32_0 = arith.constant 0 : i32
    %c0_i32_1 = arith.constant 0 : i32
    return %c0_i32, %c0_i32_0 : i32, i32
  }
  func.func @transform_2(%arg0: i32) -> (i32, i32) {
    %c0_i32 = arith.constant 0 : i32
    %c0_i32_0 = arith.constant 0 : i32
    return %arg0, %c0_i32 : i32, i32
  }
}

</mosaic_0001>

<bundles_post_ra>
// kernel: _lambda_.1
= control target key start
LH: loop header
LB: loop body
LE: loop exit
PB: predicated region body
PF: predicated region fallthrough
CT: control target
= control target key end

     0   :  { %7 = vsyncpa [#allocation3], 0  ;;  %s1326_s9 = smov [#allocation2]   ;;  %s1468_s0 = inlined_call_operand.vmem [shape: f32[8,128], index: 0, kind: input, shape index: {}]   ;;  %s1469_s1 = inlined_call_operand.hbm [shape: bf16[1040,128], index: 1, kind: input, shape index: {}]   ;;  %s1470_s2 = inlined_call_operand.vmem [shape: f32[8,128], index: 2, kind: output, shape index: {}]  }
   0x1   :  { %s15_s10 = sshll.u32 %s1326_s9, 4  ;;  %s1302_s13 = scalar_lea.hbm %s1469_s1, 8320  ;;  %s16_s10 = int_to_ptr.vmem [resolvable:$true] %s15_s10 }
   0x2   :  { %p1303_p0 = scmp.ne.s32.totalorder %s1469_s1, %s1302_s13  ;;  %p1306_p1 = scmp.lt.u32.totalorder %s1302_s13, %s1469_s1 }
   0x4   :  { %p1308_p2 = pnand %p1306_p1, %p1303_p0 }
   0x6   :  { %1311 = shalt.err (!%p1308_p2)
}
   0x7   :  { %s1312_s18 = scalar_lea.vmem %s16_s10, 8320  ;;  %p1317_p4 = scmp.lt.s32.totalorder %s16_s10, %s16_s10 }
   0x8   :  { %p1313_p3 = scmp.ne.s32.totalorder %s16_s10, %s1312_s18  ;;  %p1318_p5 = scmp.lt.s32.totalorder %s1312_s18, %s1312_s18 }
   0xa   :  { %p1319_p6 = por %p1318_p5, %p1317_p4 }
   0xc   :  { %p1320_p7 = pnand %p1319_p6, %p1313_p3 }
   0xe   :  { %1323 = shalt.err (!%p1320_p7)
}
   0xf   :  { %s1327_s19 = smov 64   ;;  %s1328_s20 = smov 4  }
  0x10   :  { %21 = dma.hbm_to_vmem [thread:$0]  %s1469_s1, 8320, %s16_s10, [#allocation3], %s1327_s19, %s1327_s19, %s1328_s20  }
  0x11   :  { %1324 = dma.done.wait [#allocation3], 8320  }
  0x12   :  { %1325 = vsyncadd [#allocation3], 4294958976  ;;  %v1329_v0 = vmov 0.0   ;;  %vm1330_vm0 = vmmov 0   ;;  %v1234_v1 = vld [vmem:[#allocation2] sm:$0xff]   ;;  %v1235_v2 = vld [vmem:[#allocation2 + $0x8] sm:$0xff]   ;;  %v46_v25 = vlaneseq }
  0x13   :  { %1069 = vmatprep.subr.bf16.mxu0 %v1329_v0  ;;  %1085 = vmatprep.mubr.msk.bf16.mxu0 %vm1330_vm0, %v1329_v0  ;;  %v1236_v3 = vld [vmem:[#allocation2 + $0x10] sm:$0xff]   ;;  %v1242_v4 = vld [vmem:[#allocation2 + $0x40] sm:$0xff]   ;;  %v1237_v5 = vld [vmem:[#allocation2 + $0x18] sm:$0xff]  }
  0x14   :  { %1089 = vmatprep.subr.bf16.mxu1 %v1329_v0  ;;  %1105 = vmatprep.mubr.msk.bf16.mxu1 %vm1330_vm0, %v1329_v0  ;;  %v1243_v6 = vld [vmem:[#allocation2 + $0x48] sm:$0xff]   ;;  %v1238_v7 = vld [vmem:[#allocation2 + $0x20] sm:$0xff]   ;;  %v1244_v8 = vld [vmem:[#allocation2 + $0x50] sm:$0xff]   ;;  %v1399_v26 = vshrl.u32 %v46_v25, 7 }
  0x15   :  { %1070 = vmatpush3.bf16.msra.mxu0 %v1234_v1  ;;  %1090 = vmatpush3.bf16.msra.mxu1 %v1242_v4  ;;  %v1239_v9 = vld [vmem:[#allocation2 + $0x28] sm:$0xff]   ;;  %v1245_v10 = vld [vmem:[#allocation2 + $0x58] sm:$0xff]   ;;  %v1240_v11 = vld [vmem:[#allocation2 + $0x30] sm:$0xff]  }
  0x16   :  { %1071 = vmatprep.subr.bf16.mxu0 %v1329_v0  ;;  %1091 = vmatprep.subr.bf16.mxu1 %v1329_v0  ;;  %v1246_v12 = vld [vmem:[#allocation2 + $0x60] sm:$0xff]   ;;  %v1241_v13 = vld [vmem:[#allocation2 + $0x38] sm:$0xff]   ;;  %v1247_v15 = vld [vmem:[#allocation2 + $0x68] sm:$0xff]   ;;  %v48_v29 = vsub.s32 0, %v1399_v26  ;;  %v160_v49 = vsub.s32 1, %v1399_v26 }
  0x17   :  { %v1376_v14 = vld [vmem:[%s1468_s0] sm:$0xff]  ;;  %v1248_v17 = vld [vmem:[#allocation2 + $0x70] sm:$0xff]   ;;  %v1249_v18 = vld [vmem:[#allocation2 + $0x78] sm:$0xff]  }
  0x18   :  { %v1383_v16 = vpack.c.bf16 %v1376_v14, %v1376_v14  ;;  %v1250_v19 = vld [vmem:[#allocation2 + $0x80] sm:$0xff]   ;;  %v1252_v20 = vld [vmem:[#allocation2 + $0x88] sm:$0xff]   ;;  %v1254_v21 = vld [vmem:[#allocation2 + $0x90] sm:$0xff]  }
  0x19   :  { %1072 = vmatpush3.bf16.msra.mxu0 %v1235_v2  ;;  %1092 = vmatpush3.bf16.msra.mxu1 %v1243_v6  ;;  %v1256_v22 = vld [vmem:[#allocation2 + $0x98] sm:$0xff]   ;;  %v1258_v23 = vld [vmem:[#allocation2 + $0xa0] sm:$0xff]   ;;  %v1260_v24 = vld [vmem:[#allocation2 + $0xa8] sm:$0xff]  }
  0x1a   :  { %1073 = vmatprep.subr.bf16.mxu0 %v1329_v0  ;;  %1093 = vmatprep.subr.bf16.mxu1 %v1329_v0  ;;  %v44_v27 = vld [vmem:[#allocation2 + $0x200] sm:$0x1]  ;;  %v1253_v40 = vld [vmem:[#allocation2 + $0xc8] sm:$0xff]   ;;  %v1255_v41 = vld [vmem:[#allocation2 + $0xd0] sm:$0xff]  }
  0x1b   :  { %v45_v28 = vunpack.c.l.bf16 %v44_v27  ;;  %v1251_v38 = vld [vmem:[#allocation2 + $0xc0] sm:$0xff]   ;;  %v1257_v42 = vld [vmem:[#allocation2 + $0xd8] sm:$0xff]   ;;  %v1261_v44 = vld [vmem:[#allocation2 + $0xe8] sm:$0xff]  }
  0x1c   :  { %v1259_v43 = vld [vmem:[#allocation2 + $0xe0] sm:$0xff]   ;;  %v1262_v45 = vld [vmem:[#allocation2 + $0xb0] sm:$0xff]   ;;  %v1264_v47 = vld [vmem:[#allocation2 + $0xb8] sm:$0xff]  }
  0x1d   :  { %1074 = vmatpush3.bf16.msra.mxu0 %v1236_v3  ;;  %1094 = vmatpush3.bf16.msra.mxu1 %v1244_v8  ;;  %v49_v30 = vrot.slane %v45_v28, %v48_v29  ;;  %v1263_v46 = vld [vmem:[#allocation2 + $0xf0] sm:$0xff]   ;;  %v1265_v48 = vld [vmem:[#allocation2 + $0xf8] sm:$0xff]   ;;  %v161_v50 = vrot.slane %v45_v28, %v160_v49  ;;  %v1266_v58 = vld [vmem:[#allocation2 + $0x140] sm:$0xff]  }
  0x1e   :  { %1075 = vmatprep.subr.bf16.mxu0 %v1329_v0  ;;  %1095 = vmatprep.subr.bf16.mxu1 %v1329_v0  ;;  %v1267_v59 = vld [vmem:[#allocation2 + $0x100] sm:$0xff]   ;;  %v1268_v61 = vld [vmem:[#allocation2 + $0x148] sm:$0xff]   ;;  %v1270_v63 = vld [vmem:[#allocation2 + $0x150] sm:$0xff]  }
  0x1f   :  { %v1269_v62 = vld [vmem:[#allocation2 + $0x108] sm:$0xff]   ;;  %v1271_v1 = vld [vmem:[#allocation2 + $0x110] sm:$0xff]   ;;  %v1272_v2 = vld [vmem:[#allocation2 + $0x158] sm:$0xff]  }
  0x20   :  { %v1273_v3 = vld [vmem:[#allocation2 + $0x118] sm:$0xff]   ;;  %v1274_v4 = vld [vmem:[#allocation2 + $0x160] sm:$0xff]   ;;  %v1276_v6 = vld [vmem:[#allocation2 + $0x168] sm:$0xff]  }
  0x21   :  { %1076 = vmatpush3.bf16.msra.mxu0 %v1237_v5  ;;  %1096 = vmatpush3.bf16.msra.mxu1 %v1245_v10  ;;  %v1275_v5 = vld [vmem:[#allocation2 + $0x120] sm:$0xff]   ;;  %v1278_v8 = vld [vmem:[#allocation2 + $0x170] sm:$0xff]   ;;  %v1280_v10 = vld [vmem:[#allocation2 + $0x178] sm:$0xff]  }
  0x22   :  { %1077 = vmatprep.subr.bf16.mxu0 %v1329_v0  ;;  %1097 = vmatprep.subr.bf16.mxu1 %v1329_v0  ;;  %v1294_v49 = vld [vmem:[#allocation2 + $0x1e0] sm:$0xff]  }
  0x25   :  { %1078 = vmatpush3.bf16.msra.mxu0 %v1238_v7  ;;  %1098 = vmatpush3.bf16.msra.mxu1 %v1246_v12  ;;  %v1277_v7 = vld [vmem:[#allocation2 + $0x128] sm:$0xff]   ;;  %v1282_v12 = vld [vmem:[#allocation2 + $0x180] sm:$0xff]  }
  0x26   :  { %1079 = vmatprep.subr.bf16.mxu0 %v1329_v0  ;;  %1099 = vmatprep.subr.bf16.mxu1 %v1329_v0 }
  0x29   :  { %1080 = vmatpush3.bf16.msra.mxu0 %v1239_v9  ;;  %1100 = vmatpush3.bf16.msra.mxu1 %v1247_v15  ;;  %v1279_v9 = vld [vmem:[#allocation2 + $0x130] sm:$0xff]  }
  0x2a   :  { %1081 = vmatprep.subr.bf16.mxu0 %v1329_v0  ;;  %1101 = vmatprep.subr.bf16.mxu1 %v1329_v0  ;;  %v1284_v15 = vld [vmem:[#allocation2 + $0x190] sm:$0xff]  }
  0x2d   :  { %1082 = vmatpush3.bf16.msra.mxu0 %v1240_v11  ;;  %1102 = vmatpush3.bf16.msra.mxu1 %v1248_v17  ;;  %v1281_v11 = vld [vmem:[#allocation2 + $0x138] sm:$0xff]  }
  0x2e   :  { %1083 = vmatprep.subr.bf16.mxu0 %v1329_v0  ;;  %1103 = vmatprep.subr.bf16.mxu1 %v1329_v0  ;;  %v1285_v17 = vld [vmem:[#allocation2 + $0x198] sm:$0xff]  }
  0x31   :  { %1084 = vmatpush3.bf16.msra.mxu0 %v1241_v13  ;;  %1104 = vmatpush3.bf16.msra.mxu1 %v1249_v18  ;;  %v1283_v13 = vld [vmem:[#allocation2 + $0x188] sm:$0xff]  }
  0x32   :  { %1109 = vmatprep.subr.bf16.mxu0 %v1329_v0  ;;  %1129 = vmatprep.subr.bf16.mxu1 %v1329_v0  ;;  %v1287_v18 = vld [vmem:[#allocation2 + $0x1a8] sm:$0xff]  }
  0x34   :  { %1086 = vmatmul.mubr.bf16.vlgmr.msra.gmra.mrb[0].mxu0 %v1383_v16 }
  0x35   :  { %1125 = vmatprep.mubr.msk.bf16.mxu0 %vm1330_vm0, %v1329_v0  ;;  %1110 = vmatpush3.bf16.msra.mxu0 %v1250_v19  ;;  %v270_v19 = vld [vmem:[#allocation2 + $0x200] sm:$0x2] }
  0x36   :  { %1111 = vmatprep.subr.bf16.mxu0 %v1329_v0 }
  0x39   :  { %1112 = vmatpush3.bf16.msra.mxu0 %v1252_v20  ;;  %v271_v20 = vunpack.c.l.bf16 %v270_v19 }
  0x3a   :  { %1113 = vmatprep.subr.bf16.mxu0 %v1329_v0 }
  0x3d   :  { %1114 = vmatpush3.bf16.msra.mxu0 %v1254_v21  ;;  %v382_v21 = vsub.s32 3, %v1399_v26 }
  0x3e   :  { %1115 = vmatprep.subr.bf16.mxu0 %v1329_v0 }
  0x41   :  { %1116 = vmatpush3.bf16.msra.mxu0 %v1256_v22  ;;  %v274_v22 = vsub.s32 2, %v1399_v26 }
  0x42   :  { %1117 = vmatprep.subr.bf16.mxu0 %v1329_v0 }
  0x45   :  { %1118 = vmatpush3.bf16.msra.mxu0 %v1258_v23  ;;  %v383_v23 = vrot.slane %v271_v20, %v382_v21 }
  0x46   :  { %1119 = vmatprep.subr.bf16.mxu0 %v1329_v0 }
  0x49   :  { %1120 = vmatpush3.bf16.msra.mxu0 %v1260_v24  ;;  %v275_v24 = vrot.slane %v271_v20, %v274_v22 }
  0x4a   :  { %1121 = vmatprep.subr.bf16.mxu0 %v1329_v0 }
  0x4d   :  { %1122 = vmatpush3.bf16.msra.mxu0 %v1262_v45  ;;  %v1289_v45 = vld [vmem:[#allocation2 + $0x1b8] sm:$0xff]  }
  0x4e   :  { %1123 = vmatprep.subr.bf16.mxu0 %v1329_v0 }
  0x51   :  { %1124 = vmatpush3.bf16.msra.mxu0 %v1264_v47  ;;  %v1292_v47 = vld [vmem:[#allocation2 + $0x1d0] sm:$0xff]  }
  0x52   :  { %1149 = vmatprep.subr.bf16.mxu0 %v1329_v0 }
 0x107   :  { %v132_v31 = vpop.f32.mrb[0].mxu0 }
 0x108   :  { %v133_v32 = vadd.f32 %v132_v31, %v49_v30  ;;  %v1087_v33 = vpop.f32.mrb[1].mxu0 }
 0x109   :  { %v135_v34 = vpop.f32.mrb[2].mxu0 }
 0x10a   :  { %vm138_vm1 = vcmp.gt.f32.partialorder %v133_v32, 0.0  ;;  %v139_v35 = vmul.f32 0.2, %v133_v32  ;;  %v1088_v36 = vpop.f32.mrb[3].mxu0 }
 0x10c   :  { %v140_v37 = vsel %vm138_vm1, %v133_v32, %v139_v35 }
 0x10d   :  { %v141_v39 = vpack.c.bf16 %v140_v37, %v140_v37 }
 0x10f   :  { %1106 = vmatmul.mubr.bf16.vlgmr.msra.gmra.mrb[0].mxu1 %v141_v39 }
 0x110   :  { %1130 = vmatpush3.bf16.msra.mxu1 %v1251_v38  ;;  %1145 = vmatprep.mubr.msk.bf16.mxu1 %vm1330_vm0, %v1329_v0 }
 0x111   :  { %1131 = vmatprep.subr.bf16.mxu1 %v1329_v0 }
 0x114   :  { %1132 = vmatpush3.bf16.msra.mxu1 %v1253_v40 }
 0x115   :  { %1133 = vmatprep.subr.bf16.mxu1 %v1329_v0 }
 0x118   :  { %1134 = vmatpush3.bf16.msra.mxu1 %v1255_v41 }
 0x119   :  { %1135 = vmatprep.subr.bf16.mxu1 %v1329_v0 }
 0x11c   :  { %1136 = vmatpush3.bf16.msra.mxu1 %v1257_v42 }
 0x11d   :  { %1137 = vmatprep.subr.bf16.mxu1 %v1329_v0 }
 0x120   :  { %1138 = vmatpush3.bf16.msra.mxu1 %v1259_v43 }
 0x121   :  { %1139 = vmatprep.subr.bf16.mxu1 %v1329_v0 }
 0x124   :  { %1140 = vmatpush3.bf16.msra.mxu1 %v1261_v44  ;;  %v1288_v44 = vld [vmem:[#allocation2 + $0x1b0] sm:$0xff]  }
 0x125   :  { %1141 = vmatprep.subr.bf16.mxu1 %v1329_v0 }
 0x128   :  { %1142 = vmatpush3.bf16.msra.mxu1 %v1263_v46  ;;  %v1291_v46 = vld [vmem:[#allocation2 + $0x1c8] sm:$0xff]  }
 0x129   :  { %1143 = vmatprep.subr.bf16.mxu1 %v1329_v0 }
 0x12c   :  { %1144 = vmatpush3.bf16.msra.mxu1 %v1265_v48  ;;  %v1293_v48 = vld [vmem:[#allocation2 + $0x1d8] sm:$0xff]  }
 0x12d   :  { %1169 = vmatprep.subr.bf16.mxu1 %v1329_v0 }
 0x1e2   :  { %v244_v51 = vpop.f32.mrb[0].mxu1 }
 0x1e3   :  { %v245_v52 = vadd.f32 %v244_v51, %v161_v50  ;;  %v1107_v53 = vpop.f32.mrb[1].mxu1  ;;  %v1295_v50 = vld [vmem:[#allocation2 + $0x1e8] sm:$0xff]   ;;  %v683_v51 = vld [vmem:[#allocation2 + $0x200] sm:$0x4] }
 0x1e4   :  { %v247_v54 = vpop.f32.mrb[2].mxu1  ;;  %v687_v53 = vsub.s32 4, %v1399_v26 }
 0x1e5   :  { %vm250_vm2 = vcmp.gt.f32.partialorder %v245_v52, 0.0  ;;  %v251_v55 = vmul.f32 0.2, %v245_v52  ;;  %v1108_v56 = vpop.f32.mrb[3].mxu1 }
 0x1e7   :  { %v252_v57 = vsel %vm250_vm2, %v245_v52, %v251_v55  ;;  %v684_v52 = vunpack.c.l.bf16 %v683_v51 }
 0x1e8   :  { %v253_v60 = vpack.c.bf16 %v252_v57, %v252_v57 }
 0x1e9   :  { %v688_v54 = vrot.slane %v684_v52, %v687_v53 }
 0x1ea   :  { %1126 = vmatmul.mubr.bf16.vlgmr.msra.gmra.mrb[4].mxu0 %v253_v60  ;;  %1146 = vmatmul.mubr.bf16.vlgmr.msra.gmra.mrb[4].mxu1 %v253_v60 }
 0x1eb   :  { %1150 = vmatpush3.bf16.msra.mxu0 %v1266_v58  ;;  %1170 = vmatpush3.bf16.msra.mxu1 %v1267_v59 }
 0x1ec   :  { %1151 = vmatprep.subr.bf16.mxu0 %v1329_v0  ;;  %1171 = vmatprep.subr.bf16.mxu1 %v1329_v0 }
 0x1ed   :  { %1165 = vmatprep.mubr.msk.bf16.mxu0 %vm1330_vm0, %v1329_v0  ;;  %1185 = vmatprep.mubr.msk.bf16.mxu1 %vm1330_vm0, %v1329_v0 }
 0x1ef   :  { %1152 = vmatpush3.bf16.msra.mxu0 %v1268_v61  ;;  %1172 = vmatpush3.bf16.msra.mxu1 %v1269_v62 }
 0x1f0   :  { %1153 = vmatprep.subr.bf16.mxu0 %v1329_v0  ;;  %1173 = vmatprep.subr.bf16.mxu1 %v1329_v0 }
 0x1f3   :  { %1154 = vmatpush3.bf16.msra.mxu0 %v1270_v63  ;;  %1174 = vmatpush3.bf16.msra.mxu1 %v1271_v1  ;;  %v1296_v1 = vld [vmem:[#allocation2 + $0x1f0] sm:$0xff]  }
 0x1f4   :  { %1155 = vmatprep.subr.bf16.mxu0 %v1329_v0  ;;  %1175 = vmatprep.subr.bf16.mxu1 %v1329_v0 }
 0x1f7   :  { %1156 = vmatpush3.bf16.msra.mxu0 %v1272_v2  ;;  %1176 = vmatpush3.bf16.msra.mxu1 %v1273_v3  ;;  %v1297_v2 = vld [vmem:[#allocation2 + $0x1f8] sm:$0xff]   ;;  %v712_v3 = vsub.s32 5, %v1399_v26 }
 0x1f8   :  { %1157 = vmatprep.subr.bf16.mxu0 %v1329_v0  ;;  %1177 = vmatprep.subr.bf16.mxu1 %v1329_v0 }
 0x1fb   :  { %1158 = vmatpush3.bf16.msra.mxu0 %v1274_v4  ;;  %1178 = vmatpush3.bf16.msra.mxu1 %v1275_v5  ;;  %v713_v4 = vrot.slane %v684_v52, %v712_v3 }
 0x1fc   :  { %1159 = vmatprep.subr.bf16.mxu0 %v1329_v0  ;;  %1179 = vmatprep.subr.bf16.mxu1 %v1329_v0 }
 0x1ff   :  { %1160 = vmatpush3.bf16.msra.mxu0 %v1276_v6  ;;  %1180 = vmatpush3.bf16.msra.mxu1 %v1277_v7 }
 0x200   :  { %1161 = vmatprep.subr.bf16.mxu0 %v1329_v0  ;;  %1181 = vmatprep.subr.bf16.mxu1 %v1329_v0 }
 0x203   :  { %1162 = vmatpush3.bf16.msra.mxu0 %v1278_v8  ;;  %1182 = vmatpush3.bf16.msra.mxu1 %v1279_v9 }
 0x204   :  { %1163 = vmatprep.subr.bf16.mxu0 %v1329_v0  ;;  %1183 = vmatprep.subr.bf16.mxu1 %v1329_v0 }
 0x207   :  { %1164 = vmatpush3.bf16.msra.mxu0 %v1280_v10  ;;  %1184 = vmatpush3.bf16.msra.mxu1 %v1281_v11 }
 0x208   :  { %1189 = vmatprep.subr.bf16.mxu0 %v1329_v0  ;;  %1209 = vmatprep.subr.bf16.mxu1 %v1329_v0 }
 0x20a   :  { %1166 = vmatmul.mubr.bf16.vlgmr.msra.gmra.mrb[8].mxu0 %v1383_v16  ;;  %v1286_v16 = vld [vmem:[#allocation2 + $0x1a0] sm:$0xff]  }
 0x20b   :  { %1205 = vmatprep.mubr.msk.bf16.mxu0 %vm1330_vm0, %v1329_v0  ;;  %1190 = vmatpush3.bf16.msra.mxu0 %v1282_v12 }
 0x20c   :  { %1191 = vmatprep.subr.bf16.mxu0 %v1329_v0 }
 0x20f   :  { %1192 = vmatpush3.bf16.msra.mxu0 %v1283_v13  ;;  %v822_v13 = vld [vmem:[#allocation2 + $0x200] sm:$0x8] }
 0x210   :  { %1193 = vmatprep.subr.bf16.mxu0 %v1329_v0 }
 0x213   :  { %1194 = vmatpush3.bf16.msra.mxu0 %v1284_v15  ;;  %v823_v15 = vunpack.c.l.bf16 %v822_v13 }
 0x214   :  { %1195 = vmatprep.subr.bf16.mxu0 %v1329_v0 }
 0x217   :  { %1196 = vmatpush3.bf16.msra.mxu0 %v1285_v17  ;;  %v826_v17 = vsub.s32 6, %v1399_v26 }
 0x218   :  { %1197 = vmatprep.subr.bf16.mxu0 %v1329_v0 }
 0x21b   :  { %1198 = vmatpush3.bf16.msra.mxu0 %v1286_v16 }
 0x21c   :  { %1199 = vmatprep.subr.bf16.mxu0 %v1329_v0 }
 0x21f   :  { %1200 = vmatpush3.bf16.msra.mxu0 %v1287_v18 }
 0x220   :  { %1201 = vmatprep.subr.bf16.mxu0 %v1329_v0 }
 0x223   :  { %1202 = vmatpush3.bf16.msra.mxu0 %v1288_v44 }
 0x224   :  { %1203 = vmatprep.subr.bf16.mxu0 %v1329_v0 }
 0x227   :  { %1204 = vmatpush3.bf16.msra.mxu0 %v1289_v45 }
 0x2bd   :  { %v358_v27 = vpop.f32.mrb[4].mxu0  ;;  %v466_v28 = vpop.f32.mrb[4].mxu1 }
 0x2be   :  { %v467_v29 = vadd.f32 %v466_v28, %v383_v23  ;;  %v1127_v30 = vpop.f32.mrb[5].mxu0  ;;  %v1147_v31 = vpop.f32.mrb[5].mxu1  ;;  %v1446_v34 = vadd.f32 %v358_v27, %v275_v24  ;;  %v923_v27 = vand.u32 127, %v46_v25 }
 0x2bf   :  { %v361_v32 = vpop.f32.mrb[6].mxu0  ;;  %v469_v33 = vpop.f32.mrb[6].mxu1 }
 0x2c0   :  { %v472_v35 = vmul.f32 %v467_v29, %v1376_v14  ;;  %v1128_v36 = vpop.f32.mrb[7].mxu0  ;;  %v1148_v37 = vpop.f32.mrb[7].mxu1  ;;  %v1290_v14 = vld [vmem:[#allocation2 + $0x1c0] sm:$0xff]   ;;  %vm924_vm5 = vcmp.lt.s32.totalorder %v923_v27, 64 }
 0x2c2   :  { %v473_v38 = vadd.f32 %v472_v35, %v1446_v34 }
 0x2c4   :  { %v474_v39 = vpack.c.bf16 %v473_v38, %v473_v38 }
 0x2c6   :  { %1186 = vmatmul.mubr.bf16.vlgmr.msra.gmra.mrb[8].mxu1 %v474_v39 }
 0x2c7   :  { %1225 = vmatprep.mubr.msk.bf16.mxu1 %vm1330_vm0, %v1329_v0  ;;  %1210 = vmatpush3.bf16.msra.mxu1 %v1290_v14 }
 0x2c8   :  { %1211 = vmatprep.subr.bf16.mxu1 %v1329_v0 }
 0x2cb   :  { %1212 = vmatpush3.bf16.msra.mxu1 %v1291_v46 }
 0x2cc   :  { %1213 = vmatprep.subr.bf16.mxu1 %v1329_v0 }
 0x2cf   :  { %1214 = vmatpush3.bf16.msra.mxu1 %v1292_v47 }
 0x2d0   :  { %1215 = vmatprep.subr.bf16.mxu1 %v1329_v0 }
 0x2d3   :  { %1216 = vmatpush3.bf16.msra.mxu1 %v1293_v48 }
 0x2d4   :  { %1217 = vmatprep.subr.bf16.mxu1 %v1329_v0 }
 0x2d7   :  { %1218 = vmatpush3.bf16.msra.mxu1 %v1294_v49 }
 0x2d8   :  { %1219 = vmatprep.subr.bf16.mxu1 %v1329_v0 }
 0x2db   :  { %1220 = vmatpush3.bf16.msra.mxu1 %v1295_v50 }
 0x2dc   :  { %1221 = vmatprep.subr.bf16.mxu1 %v1329_v0 }
 0x2dd   :  { %v589_v40 = vpop.f32.mrb[8].mxu0 }
 0x2de   :  { %v1167_v41 = vpop.f32.mrb[9].mxu0 }
 0x2df   :  { %v592_v42 = vpop.f32.mrb[10].mxu0  ;;  %1222 = vmatpush3.bf16.msra.mxu1 %v1296_v1 }
 0x2e0   :  { %v1168_v43 = vpop.f32.mrb[11].mxu0  ;;  %1223 = vmatprep.subr.bf16.mxu1 %v1329_v0  ;;  %v827_v0 = vrot.slane %v823_v15, %v826_v17 }
 0x2e3   :  { %1224 = vmatpush3.bf16.msra.mxu1 %v1297_v2 }
 0x399   :  { %v677_v55 = vpop.f32.mrb[8].mxu1 }
 0x39a   :  { %v678_v56 = vadd.f32 %v677_v55, %v589_v40  ;;  %v1187_v57 = vpop.f32.mrb[9].mxu1 }
 0x39b   :  { %v680_v58 = vpop.f32.mrb[10].mxu1 }
 0x39c   :  { %v689_v59 = vadd.f32 %v688_v54, %v678_v56  ;;  %v1188_v60 = vpop.f32.mrb[11].mxu1 }
 0x39e   :  { %vm690_vm3 = vcmp.gt.f32.partialorder %v689_v59, 0.0  ;;  %v691_v61 = vmul.f32 0.2, %v689_v59 }
 0x3a0   :  { %v692_v62 = vsel %vm690_vm3, %v689_v59, %v691_v61 }
 0x3a1   :  { %v693_v63 = vpack.c.bf16 %v692_v62, %v692_v62 }
 0x3a3   :  { %1206 = vmatmul.mubr.bf16.vlgmr.msra.gmra.mrb[12].mxu0 %v693_v63 }
 0x476   :  { %v796_v5 = vpop.f32.mrb[12].mxu0 }
 0x477   :  { %v797_v6 = vadd.f32 %v796_v5, %v713_v4  ;;  %v1207_v7 = vpop.f32.mrb[13].mxu0 }
 0x478   :  { %v799_v8 = vpop.f32.mrb[14].mxu0 }
 0x479   :  { %vm802_vm4 = vcmp.gt.f32.partialorder %v797_v6, 0.0  ;;  %v803_v9 = vmul.f32 0.2, %v797_v6  ;;  %v1208_v10 = vpop.f32.mrb[15].mxu0 }
 0x47b   :  { %v804_v11 = vsel %vm802_vm4, %v797_v6, %v803_v9 }
 0x47c   :  { %v805_v12 = vpack.c.bf16 %v804_v11, %v804_v11 }
 0x47e   :  { %1226 = vmatmul.mubr.bf16.vlgmr.msra.gmra.mrb[12].mxu1 %v805_v12 }
 0x551   :  { %v910_v16 = vpop.f32.mrb[12].mxu1 }
 0x552   :  { %v911_v18 = vadd.f32 %v910_v16, %v827_v0  ;;  %v1227_v19 = vpop.f32.mrb[13].mxu1 }
 0x553   :  { %v913_v20 = vpop.f32.mrb[14].mxu1 }
 0x554   :  { %v996_v21 = vmul.f32 -1.442695, %v911_v18  ;;  %v1228_v22 = vpop.f32.mrb[15].mxu1 }
 0x556   :  { %1298 = vpow2.f32 %v996_v21 }
 0x560   :  { %v1299_v23 = vpop.eup %1298 }
 0x561   :  { %v919_v24 = vadd.f32 1.0, %v1299_v23 }
 0x563   :  { %1300 = vrcp.f32 %v919_v24 }
 0x56d   :  { %v1301_v28 = vpop.eup %1300 }
 0x56e   :  { %v925_v29 = vsel %vm924_vm5, %v1301_v28, %v1446_v34 }
 0x56f   :  { %926 = vst [vmem:[%s1470_s2] sm:$0xff] %v925_v29 }
 0x570   :  { %931 = vsyncpa [#allocation3], 1 }

</bundles_post_ra>
